<compile_context>
chip_gen: v7x
topology: tpu7x:2x2x1
jax: 0.10.0
libtpu: 0.0.40
codegen_flags: <defaults>
</compile_context>

<pallas_src>
import jax
import jax.numpy as jnp
from jax.experimental import pallas as pl
from jax.experimental.pallas import tpu as pltpu

# Layer dims (from the module's __init__)
ENC_DIMS = [(50, 128), (128, 64), (64, 32)]
DEC_DIMS = [(32, 64), (64, 128), (128, 50)]
REG_DIMS = [(32, 16), (16, 1)]

IN_F = 50
OUT_LANES = 128   # lane-dense output slab width
DEC_W = 50        # decoded occupies columns [0, 50)
REG_COL = 50      # regressor scalar lives in column 50


def make_params(key):
    """Deterministic parameter init (uniform +/- 1/sqrt(in)), stored [in, out]."""
    params = []
    for in_dim, out_dim in ENC_DIMS + DEC_DIMS + REG_DIMS:
        key, kw, kb = jax.random.split(key, 3)
        bound = 1.0 / (in_dim ** 0.5)
        w = jax.random.uniform(kw, (in_dim, out_dim), jnp.float32, -bound, bound)
        b = jax.random.uniform(kb, (1, out_dim), jnp.float32, -bound, bound)
        params += [w, b]
    return params


def _prepare_kernel_params(params):
    """Host-side fusion + dtype prep.

    - Collapse the activation-free regressor (32->16->1) into a single (32, 1).
    - Pad the last decoder weight (128,50) and the collapsed regressor weight
      (32,1) to 128 output lanes, then stack them along K into one (160, 128)
      weight so the kernel's final stage is a single fused matmul producing one
      unmasked lane-dense (TB, 128) slab.
    - Cast matmul weights to bf16; keep biases in f32 (bias-add on f32 acc).
    """
    (ew0, eb0, ew1, eb1, ew2, eb2,
     dw0, db0, dw1, db1, dw2, db2,
     rw0, rb0, rw1, rb1) = params

    # Collapse regressor (exact in f32: no activation between the two Linears).
    r_w = rw0 @ rw1                       # (32, 1)
    r_b = rb0 @ rw1 + rb1                 # (1, 1)

    # Pad final-stage weights/bias to 128 output lanes and fuse along K.
    w_dec_pad = jnp.zeros((128, OUT_LANES), jnp.float32).at[:, :DEC_W].set(dw2)
    w_reg_pad = jnp.zeros((32, OUT_LANES), jnp.float32).at[:, REG_COL:REG_COL + 1].set(r_w)
    w_out = jnp.concatenate([w_dec_pad, w_reg_pad], axis=0)   # (160, 128)
    b_out = (jnp.zeros((1, OUT_LANES), jnp.float32)
             .at[:, :DEC_W].set(db2)
             .at[:, REG_COL:REG_COL + 1].set(r_b))

    bf = lambda a: a.astype(jnp.bfloat16)
    weights = [bf(ew0), bf(ew1), bf(ew2), bf(dw0), bf(dw1), bf(w_out)]
    biases = [eb0, eb1, eb2, db0, db1, b_out]   # f32
    return weights + biases


def autoencoder_kernel(x_ref,
                       ew0, ew1, ew2, dw0, dw1, wout,     # bf16 weights
                       eb0, eb1, eb2, db0, db1, bout,     # f32 biases
                       out_ref):
    bf16 = jnp.bfloat16
    x = x_ref[...]                        # already bf16 (host pre-cast)

    def lin(h, w_ref, b_ref, relu):
        # bf16 MXU inputs, f32 accumulation; bias + ReLU on the f32 accumulator.
        y = jnp.dot(h, w_ref[...], preferred_element_type=jnp.float32) + b_ref[...]
        if relu:
            y = jnp.maximum(y, 0.0)
        return y.astype(bf16)

    # Encoder: Linear(50,128)+ReLU, Linear(128,64)+ReLU, Linear(64,32)
    h = lin(x, ew0, eb0, relu=True)
    h = lin(h, ew1, eb1, relu=True)
    enc = lin(h, ew2, eb2, relu=False)    # (TB, 32) bf16

    # Decoder: Linear(32,64)+ReLU, Linear(64,128)+ReLU
    d = lin(enc, dw0, db0, relu=True)
    d = lin(d, dw1, db1, relu=True)       # (TB, 128) bf16

    # Fused final stage: one K=160 matmul covers decoder-out (lanes 0..49) and
    # the collapsed regressor (lane 50) -> single lane-dense (TB, 128) store.
    de = jnp.concatenate([d, enc], axis=-1)            # (TB, 160) bf16
    out = jnp.dot(de, wout[...], preferred_element_type=jnp.float32) + bout[...]
    out_ref[...] = out.astype(out_ref.dtype)


def _choose_tile(batch, tile_b):
    """Batch tile: multiple of 16, even split of B, >=2 grid steps when large."""
    b16 = ((max(batch, 1) + 15) // 16) * 16
    n = pl.cdiv(b16, max(16, tile_b))
    if b16 >= 1024 and n < 2:
        n = 2                                   # let v7x shard tiles over 2 TCs
    tb = ((pl.cdiv(b16, n) + 15) // 16) * 16    # even split, rounded to 16
    n = pl.cdiv(b16, tb)
    return tb, n * tb


def autoencoder_forward(x, params, *, tile_b=2048):
    """Returns (decoded [B,50], output [B,1]) matching the PyTorch forward.

    Results are bf16 (bf16 matmul inputs / bf16 output slab); accumulate in f32.
    """
    B = x.shape[0]
    kparams = _prepare_kernel_params(params)

    tb, b_pad = _choose_tile(B, tile_b)
    x = x.astype(jnp.bfloat16)                  # host-side cast: halves input DMA
    if b_pad != B:
        x = jnp.pad(x, ((0, b_pad - B), (0, 0)))
    grid = (b_pad // tb,)

    x_spec = pl.BlockSpec((tb, IN_F), lambda i: (i, 0))
    const2d = lambda a: pl.BlockSpec(a.shape, lambda i: (0, 0))  # VMEM-resident
    in_specs = [x_spec] + [const2d(p) for p in kparams]
    out_spec = pl.BlockSpec((tb, OUT_LANES), lambda i: (i, 0))

    flops = 2 * b_pad * sum(i * o for i, o in ENC_DIMS + DEC_DIMS + REG_DIMS)
    param_bytes = sum(int(p.size) * p.dtype.itemsize for p in kparams)
    bytes_accessed = b_pad * (IN_F * 2 + OUT_LANES * 2) + param_bytes

    slab = pl.pallas_call(
        autoencoder_kernel,
        out_shape=jax.ShapeDtypeStruct((b_pad, OUT_LANES), jnp.bfloat16),
        grid=grid,
        in_specs=in_specs,
        out_specs=out_spec,
        compiler_params=pltpu.CompilerParams(
            dimension_semantics=("parallel",),
            vmem_limit_bytes=32 * 1024 * 1024,
        ),
        cost_estimate=pl.CostEstimate(
            flops=flops, transcendentals=0, bytes_accessed=bytes_accessed),
    )(x, *kparams)

    # bf16 slab slices (half the re-read/write of the old f32 slab); cast at the
    # consumer if f32 is required downstream.
    decoded = slab[:B, :DEC_W]
    output = slab[:B, REG_COL:REG_COL + 1]
    return decoded, output


def _reference(x, params):
    """Pure-JAX f32 reference of the original (unfused) module."""
    p = list(params)
    h = x
    for i in range(3):
        h = h @ p[2 * i] + p[2 * i + 1]
        if i < 2:
            h = jnp.maximum(h, 0.0)
    enc = h
    d = enc
    for i in range(3, 6):
        d = d @ p[2 * i] + p[2 * i + 1]
        if i < 5:
            d = jnp.maximum(d, 0.0)
    r = enc
    for i in range(6, 8):
        r = r @ p[2 * i] + p[2 * i + 1]
    return d, r


if __name__ == "__main__":
    key = jax.random.PRNGKey(0)
    key, kx = jax.random.split(key)
    params = make_params(key)

    # Small primary test: single tile (B=8 -> padded to 16 rows, grid=(1,)).
    B = 8
    x = jax.random.normal(kx, (B, 50), jnp.float32)
    decoded, output = autoencoder_forward(x, params)
    jax.block_until_ready((decoded, output))

    d_ref, o_ref = _reference(x, params)
    # bf16 matmul inputs + bf16 output slab (f32 accumulation) -> ~1e-2 rel tol.
    assert decoded.shape == (B, 50) and output.shape == (B, 1)
    assert jnp.allclose(decoded.astype(jnp.float32), d_ref, atol=5e-2, rtol=5e-2)
    assert jnp.allclose(output.astype(jnp.float32), o_ref, atol=5e-2, rtol=5e-2)

    # Exercise the multi-tile grid + batch padding path (tb=16, grid=(3,)).
    B2 = 40
    key, kx2 = jax.random.split(key)
    x2 = jax.random.normal(kx2, (B2, 50), jnp.float32)
    d2, o2 = autoencoder_forward(x2, params, tile_b=16)
    jax.block_until_ready((d2, o2))
    d2_ref, o2_ref = _reference(x2, params)
    assert d2.shape == (B2, 50) and o2.shape == (B2, 1)
    assert jnp.allclose(d2.astype(jnp.float32), d2_ref, atol=5e-2, rtol=5e-2)
    assert jnp.allclose(o2.astype(jnp.float32), o2_ref, atol=5e-2, rtol=5e-2)

    print("KERNEL_OK")
</pallas_src>

<mosaic_0001>
module attributes {stable_mosaic.version = 11 : i64} {
  func.func @autoencoder_kernel(%arg0: i32, %arg1: memref<16x50xbf16, #tpu.memory_space<vmem>>, %arg2: memref<50x128xbf16, #tpu.memory_space<vmem>>, %arg3: memref<128x64xbf16, #tpu.memory_space<vmem>>, %arg4: memref<64x32xbf16, #tpu.memory_space<vmem>>, %arg5: memref<32x64xbf16, #tpu.memory_space<vmem>>, %arg6: memref<64x128xbf16, #tpu.memory_space<vmem>>, %arg7: memref<160x128xbf16, #tpu.memory_space<vmem>>, %arg8: memref<1x128xf32, #tpu.memory_space<vmem>>, %arg9: memref<1x64xf32, #tpu.memory_space<vmem>>, %arg10: memref<1x32xf32, #tpu.memory_space<vmem>>, %arg11: memref<1x64xf32, #tpu.memory_space<vmem>>, %arg12: memref<1x128xf32, #tpu.memory_space<vmem>>, %arg13: memref<1x128xf32, #tpu.memory_space<vmem>>, %arg14: memref<16x128xbf16, #tpu.memory_space<vmem>>) attributes {dimension_semantics = [#tpu.dimension_semantics<parallel>], iteration_bounds = array<i64: 1>, scalar_prefetch = 0 : i64, scratch_operands = 0 : i64, tpu.core_type = #tpu.core_type<tc>, window_params = [{transform_indices = @transform_0, window_bounds = array<i64: 16, 50>}, {pipeline_mode = #tpu.pipeline_mode<synchronous>, transform_indices = @transform_1, window_bounds = array<i64: 50, 128>}, {pipeline_mode = #tpu.pipeline_mode<synchronous>, transform_indices = @transform_2, window_bounds = array<i64: 128, 64>}, {pipeline_mode = #tpu.pipeline_mode<synchronous>, transform_indices = @transform_3, window_bounds = array<i64: 64, 32>}, {pipeline_mode = #tpu.pipeline_mode<synchronous>, transform_indices = @transform_4, window_bounds = array<i64: 32, 64>}, {pipeline_mode = #tpu.pipeline_mode<synchronous>, transform_indices = @transform_5, window_bounds = array<i64: 64, 128>}, {pipeline_mode = #tpu.pipeline_mode<synchronous>, transform_indices = @transform_6, window_bounds = array<i64: 160, 128>}, {pipeline_mode = #tpu.pipeline_mode<synchronous>, transform_indices = @transform_7, window_bounds = array<i64: 1, 128>}, {pipeline_mode = #tpu.pipeline_mode<synchronous>, transform_indices = @transform_8, window_bounds = array<i64: 1, 64>}, {pipeline_mode = #tpu.pipeline_mode<synchronous>, transform_indices = @transform_9, window_bounds = array<i64: 1, 32>}, {pipeline_mode = #tpu.pipeline_mode<synchronous>, transform_indices = @transform_10, window_bounds = array<i64: 1, 64>}, {pipeline_mode = #tpu.pipeline_mode<synchronous>, transform_indices = @transform_11, window_bounds = array<i64: 1, 128>}, {pipeline_mode = #tpu.pipeline_mode<synchronous>, transform_indices = @transform_12, window_bounds = array<i64: 1, 128>}, {transform_indices = @transform_13, window_bounds = array<i64: 16, 128>}]} {
    %c0 = arith.constant 0 : index
    %c0_0 = arith.constant 0 : index
    %0 = vector.load %arg1[%c0, %c0_0] : memref<16x50xbf16, #tpu.memory_space<vmem>>, vector<16x50xbf16>
    %c0_1 = arith.constant 0 : index
    %c0_2 = arith.constant 0 : index
    %1 = vector.load %arg2[%c0_1, %c0_2] : memref<50x128xbf16, #tpu.memory_space<vmem>>, vector<50x128xbf16>
    %cst = arith.constant dense<0.000000e+00> : vector<16x128xf32>
    %2 = tpu.matmul %0, %1, %cst {dimension_numbers = #tpu.dot_dimension_numbers<[1], [0], [0], [1], [0, 0, 1, 1], [], []>} : vector<16x50xbf16>, vector<50x128xbf16>, vector<16x128xf32> -> vector<16x128xf32>
    %c0_3 = arith.constant 0 : index
    %c0_4 = arith.constant 0 : index
    %3 = vector.load %arg8[%c0_3, %c0_4] : memref<1x128xf32, #tpu.memory_space<vmem>>, vector<1x128xf32>
    %4 = vector.broadcast %3 : vector<1x128xf32> to vector<16x128xf32>
    %5 = arith.addf %2, %4 : vector<16x128xf32>
    %cst_5 = arith.constant 0.000000e+00 : f32
    %6 = vector.broadcast %cst_5 : f32 to vector<16x128xf32>
    %7 = arith.maximumf %5, %6 : vector<16x128xf32>
    %8 = arith.truncf %7 : vector<16x128xf32> to vector<16x128xbf16>
    %c0_6 = arith.constant 0 : index
    %c0_7 = arith.constant 0 : index
    %9 = vector.load %arg3[%c0_6, %c0_7] : memref<128x64xbf16, #tpu.memory_space<vmem>>, vector<128x64xbf16>
    %cst_8 = arith.constant dense<0.000000e+00> : vector<16x64xf32>
    %10 = tpu.matmul %8, %9, %cst_8 {dimension_numbers = #tpu.dot_dimension_numbers<[1], [0], [0], [1], [0, 0, 1, 1], [], []>} : vector<16x128xbf16>, vector<128x64xbf16>, vector<16x64xf32> -> vector<16x64xf32>
    %c0_9 = arith.constant 0 : index
    %c0_10 = arith.constant 0 : index
    %11 = vector.load %arg9[%c0_9, %c0_10] : memref<1x64xf32, #tpu.memory_space<vmem>>, vector<1x64xf32>
    %12 = vector.broadcast %11 : vector<1x64xf32> to vector<16x64xf32>
    %13 = arith.addf %10, %12 : vector<16x64xf32>
    %cst_11 = arith.constant 0.000000e+00 : f32
    %14 = vector.broadcast %cst_11 : f32 to vector<16x64xf32>
    %15 = arith.maximumf %13, %14 : vector<16x64xf32>
    %16 = arith.truncf %15 : vector<16x64xf32> to vector<16x64xbf16>
    %c0_12 = arith.constant 0 : index
    %c0_13 = arith.constant 0 : index
    %17 = vector.load %arg4[%c0_12, %c0_13] : memref<64x32xbf16, #tpu.memory_space<vmem>>, vector<64x32xbf16>
    %cst_14 = arith.constant dense<0.000000e+00> : vector<16x32xf32>
    %18 = tpu.matmul %16, %17, %cst_14 {dimension_numbers = #tpu.dot_dimension_numbers<[1], [0], [0], [1], [0, 0, 1, 1], [], []>} : vector<16x64xbf16>, vector<64x32xbf16>, vector<16x32xf32> -> vector<16x32xf32>
    %c0_15 = arith.constant 0 : index
    %c0_16 = arith.constant 0 : index
    %19 = vector.load %arg10[%c0_15, %c0_16] : memref<1x32xf32, #tpu.memory_space<vmem>>, vector<1x32xf32>
    %20 = vector.broadcast %19 : vector<1x32xf32> to vector<16x32xf32>
    %21 = arith.addf %18, %20 : vector<16x32xf32>
    %22 = arith.truncf %21 : vector<16x32xf32> to vector<16x32xbf16>
    %c0_17 = arith.constant 0 : index
    %c0_18 = arith.constant 0 : index
    %23 = vector.load %arg5[%c0_17, %c0_18] : memref<32x64xbf16, #tpu.memory_space<vmem>>, vector<32x64xbf16>
    %cst_19 = arith.constant dense<0.000000e+00> : vector<16x64xf32>
    %24 = tpu.matmul %22, %23, %cst_19 {dimension_numbers = #tpu.dot_dimension_numbers<[1], [0], [0], [1], [0, 0, 1, 1], [], []>} : vector<16x32xbf16>, vector<32x64xbf16>, vector<16x64xf32> -> vector<16x64xf32>
    %c0_20 = arith.constant 0 : index
    %c0_21 = arith.constant 0 : index
    %25 = vector.load %arg11[%c0_20, %c0_21] : memref<1x64xf32, #tpu.memory_space<vmem>>, vector<1x64xf32>
    %26 = vector.broadcast %25 : vector<1x64xf32> to vector<16x64xf32>
    %27 = arith.addf %24, %26 : vector<16x64xf32>
    %cst_22 = arith.constant 0.000000e+00 : f32
    %28 = vector.broadcast %cst_22 : f32 to vector<16x64xf32>
    %29 = arith.maximumf %27, %28 : vector<16x64xf32>
    %30 = arith.truncf %29 : vector<16x64xf32> to vector<16x64xbf16>
    %c0_23 = arith.constant 0 : index
    %c0_24 = arith.constant 0 : index
    %31 = vector.load %arg6[%c0_23, %c0_24] : memref<64x128xbf16, #tpu.memory_space<vmem>>, vector<64x128xbf16>
    %cst_25 = arith.constant dense<0.000000e+00> : vector<16x128xf32>
    %32 = tpu.matmul %30, %31, %cst_25 {dimension_numbers = #tpu.dot_dimension_numbers<[1], [0], [0], [1], [0, 0, 1, 1], [], []>} : vector<16x64xbf16>, vector<64x128xbf16>, vector<16x128xf32> -> vector<16x128xf32>
    %c0_26 = arith.constant 0 : index
    %c0_27 = arith.constant 0 : index
    %33 = vector.load %arg12[%c0_26, %c0_27] : memref<1x128xf32, #tpu.memory_space<vmem>>, vector<1x128xf32>
    %34 = vector.broadcast %33 : vector<1x128xf32> to vector<16x128xf32>
    %35 = arith.addf %32, %34 : vector<16x128xf32>
    %cst_28 = arith.constant 0.000000e+00 : f32
    %36 = vector.broadcast %cst_28 : f32 to vector<16x128xf32>
    %37 = arith.maximumf %35, %36 : vector<16x128xf32>
    %38 = arith.truncf %37 : vector<16x128xf32> to vector<16x128xbf16>
    %39 = tpu.concatenate %38, %22 in 1 : vector<16x128xbf16>, vector<16x32xbf16> -> vector<16x160xbf16>
    %c0_29 = arith.constant 0 : index
    %c0_30 = arith.constant 0 : index
    %40 = vector.load %arg7[%c0_29, %c0_30] : memref<160x128xbf16, #tpu.memory_space<vmem>>, vector<160x128xbf16>
    %cst_31 = arith.constant dense<0.000000e+00> : vector<16x128xf32>
    %41 = tpu.matmul %39, %40, %cst_31 {dimension_numbers = #tpu.dot_dimension_numbers<[1], [0], [0], [1], [0, 0, 1, 1], [], []>} : vector<16x160xbf16>, vector<160x128xbf16>, vector<16x128xf32> -> vector<16x128xf32>
    %c0_32 = arith.constant 0 : index
    %c0_33 = arith.constant 0 : index
    %42 = vector.load %arg13[%c0_32, %c0_33] : memref<1x128xf32, #tpu.memory_space<vmem>>, vector<1x128xf32>
    %43 = vector.broadcast %42 : vector<1x128xf32> to vector<16x128xf32>
    %44 = arith.addf %41, %43 : vector<16x128xf32>
    %45 = arith.truncf %44 : vector<16x128xf32> to vector<16x128xbf16>
    %c0_34 = arith.constant 0 : index
    %c0_35 = arith.constant 0 : index
    %46 = vector.load %arg14[%c0_34, %c0_35] : memref<16x128xbf16, #tpu.memory_space<vmem>>, vector<16x128xbf16>
    tpu.vector_store %arg14[%c0_34, %c0_35], %45 {strides = array<i32>} : memref<16x128xbf16, #tpu.memory_space<vmem>>, vector<16x128xbf16>,
    return
  }
  func.func @transform_0(%arg0: i32) -> (i32, i32) {
    %c0_i32 = arith.constant 0 : i32
    %c0_i32_0 = arith.constant 0 : i32
    return %arg0, %c0_i32 : i32, i32
  }
  func.func @transform_1(%arg0: i32) -> (i32, i32) {
    %c0_i32 = arith.constant 0 : i32
    %c0_i32_0 = arith.constant 0 : i32
    %c0_i32_1 = arith.constant 0 : i32
    return %c0_i32, %c0_i32_0 : i32, i32
  }
  func.func @transform_2(%arg0: i32) -> (i32, i32) {
    %c0_i32 = arith.constant 0 : i32
    %c0_i32_0 = arith.constant 0 : i32
    %c0_i32_1 = arith.constant 0 : i32
    return %c0_i32, %c0_i32_0 : i32, i32
  }
  func.func @transform_3(%arg0: i32) -> (i32, i32) {
    %c0_i32 = arith.constant 0 : i32
    %c0_i32_0 = arith.constant 0 : i32
    %c0_i32_1 = arith.constant 0 : i32
    return %c0_i32, %c0_i32_0 : i32, i32
  }
  func.func @transform_4(%arg0: i32) -> (i32, i32) {
    %c0_i32 = arith.constant 0 : i32
    %c0_i32_0 = arith.constant 0 : i32
    %c0_i32_1 = arith.constant 0 : i32
    return %c0_i32, %c0_i32_0 : i32, i32
  }
  func.func @transform_5(%arg0: i32) -> (i32, i32) {
    %c0_i32 = arith.constant 0 : i32
    %c0_i32_0 = arith.constant 0 : i32
    %c0_i32_1 = arith.constant 0 : i32
    return %c0_i32, %c0_i32_0 : i32, i32
  }
  func.func @transform_6(%arg0: i32) -> (i32, i32) {
    %c0_i32 = arith.constant 0 : i32
    %c0_i32_0 = arith.constant 0 : i32
    %c0_i32_1 = arith.constant 0 : i32
    return %c0_i32, %c0_i32_0 : i32, i32
  }
  func.func @transform_7(%arg0: i32) -> (i32, i32) {
    %c0_i32 = arith.constant 0 : i32
    %c0_i32_0 = arith.constant 0 : i32
    %c0_i32_1 = arith.constant 0 : i32
    return %c0_i32, %c0_i32_0 : i32, i32
  }
  func.func @transform_8(%arg0: i32) -> (i32, i32) {
    %c0_i32 = arith.constant 0 : i32
    %c0_i32_0 = arith.constant 0 : i32
    %c0_i32_1 = arith.constant 0 : i32
    return %c0_i32, %c0_i32_0 : i32, i32
  }
  func.func @transform_9(%arg0: i32) -> (i32, i32) {
    %c0_i32 = arith.constant 0 : i32
    %c0_i32_0 = arith.constant 0 : i32
    %c0_i32_1 = arith.constant 0 : i32
    return %c0_i32, %c0_i32_0 : i32, i32
  }
  func.func @transform_10(%arg0: i32) -> (i32, i32) {
    %c0_i32 = arith.constant 0 : i32
    %c0_i32_0 = arith.constant 0 : i32
    %c0_i32_1 = arith.constant 0 : i32
    return %c0_i32, %c0_i32_0 : i32, i32
  }
  func.func @transform_11(%arg0: i32) -> (i32, i32) {
    %c0_i32 = arith.constant 0 : i32
    %c0_i32_0 = arith.constant 0 : i32
    %c0_i32_1 = arith.constant 0 : i32
    return %c0_i32, %c0_i32_0 : i32, i32
  }
  func.func @transform_12(%arg0: i32) -> (i32, i32) {
    %c0_i32 = arith.constant 0 : i32
    %c0_i32_0 = arith.constant 0 : i32
    %c0_i32_1 = arith.constant 0 : i32
    return %c0_i32, %c0_i32_0 : i32, i32
  }
  func.func @transform_13(%arg0: i32) -> (i32, i32) {
    %c0_i32 = arith.constant 0 : i32
    %c0_i32_0 = arith.constant 0 : i32
    return %arg0, %c0_i32 : i32, i32
  }
}

</mosaic_0001>

<bundles_post_ra>
// kernel: tpu_custom_call.1
= control target key start
LH: loop header
LB: loop body
LE: loop exit
PB: predicated region body
PF: predicated region fallthrough
CT: control target
= control target key end

     0   :  { %18 = vsyncpa [#allocation3], 0  ;;  %s1153_s0 = inlined_call_operand.hbm [shape: bf16[16,50], index: 0, kind: input, shape index: {}]   ;;  %s1154_s1 = inlined_call_operand.vmem [shape: bf16[50,128], index: 1, kind: input, shape index: {}]   ;;  %s1155_s2 = inlined_call_operand.vmem [shape: bf16[128,64], index: 2, kind: input, shape index: {}]   ;;  %s1156_s3 = inlined_call_operand.vmem [shape: bf16[64,32], index: 3, kind: input, shape index: {}]   ;;  %s1157_s4 = inlined_call_operand.vmem [shape: bf16[32,64], index: 4, kind: input, shape index: {}]   ;;  %s1158_s5 = inlined_call_operand.vmem [shape: bf16[64,128], index: 5, kind: input, shape index: {}]   ;;  %s1159_s6 = inlined_call_operand.vmem [shape: bf16[160,128], index: 6, kind: input, shape index: {}]   ;;  %s1160_s7 = inlined_call_operand.vmem [shape: f32[1,128], index: 7, kind: input, shape index: {}]   ;;  %s1161_s8 = inlined_call_operand.vmem [shape: f32[1,64], index: 8, kind: input, shape index: {}]   ;;  %s1162_s9 = inlined_call_operand.vmem [shape: f32[1,32], index: 9, kind: input, shape index: {}]   ;;  %s1163_s10 = inlined_call_operand.vmem [shape: f32[1,64], index: 10, kind: input, shape index: {}]   ;;  %s1164_s11 = inlined_call_operand.vmem [shape: f32[1,128], index: 11, kind: input, shape index: {}]   ;;  %s1165_s12 = inlined_call_operand.vmem [shape: f32[1,128], index: 12, kind: input, shape index: {}]   ;;  %s1166_s13 = inlined_call_operand.hbm [shape: bf16[16,128], index: 13, kind: output, shape index: {}]  }
   0x1   :  { %19 = vsyncpa [#allocation4], 0  ;;  %s898_s25 = smov [#allocation2]   ;;  %s850_s29 = scalar_lea.hbm %s1153_s0, 128 }
   0x2   :  { %s25_s26 = sshll.u32 %s898_s25, 4  ;;  %p851_p0 = scmp.ne.s32.totalorder %s1153_s0, %s850_s29  ;;  %s26_s26 = int_to_ptr.vmem [resolvable:$true] %s25_s26 }
   0x3   :  { %p854_p1 = scmp.lt.u32.totalorder %s850_s29, %s1153_s0 }
   0x5   :  { %p856_p2 = pnand %p854_p1, %p851_p0 }
   0x7   :  { %859 = shalt.err (!%p856_p2)
}
   0x8   :  { %s860_s17 = scalar_lea.vmem %s26_s26, 128  ;;  %p865_p4 = scmp.lt.s32.totalorder %s26_s26, %s26_s26 }
   0x9   :  { %p861_p3 = scmp.ne.s32.totalorder %s26_s26, %s860_s17  ;;  %p866_p5 = scmp.lt.s32.totalorder %s860_s17, %s860_s17 }
   0xb   :  { %p867_p6 = por %p866_p5, %p865_p4 }
   0xd   :  { %p868_p7 = pnand %p867_p6, %p861_p3 }
   0xf   :  { %871 = shalt.err (!%p868_p7)
}
  0x10   :  { %s899_s18 = smov 64   ;;  %s900_s19 = smov 4  }
  0x11   :  { %31 = dma.hbm_to_vmem [thread:$0]  %s1153_s0, 128, %s26_s26, [#allocation3], %s899_s18, %s899_s18, %s900_s19  }
  0x12   :  { %894 = dma.done.wait [#allocation3], 128  }
  0x13   :  { %895 = vsyncadd [#allocation3], 4294967168  ;;  %v901_v0 = vmov 0.0   ;;  %vm902_vm0 = vmmov 0   ;;  %v817_v1 = vld [vmem:[%s1154_s1] sm:$0xff]   ;;  %v818_v2 = vld [vmem:[%s1154_s1 + $0x8] sm:$0xff]  }
  0x14   :  { %746 = vmatprep.subr.bf16.mxu1 %v901_v0  ;;  %754 = vmatprep.mubr.msk.bf16.mxu1 %vm902_vm0, %v901_v0  ;;  %v820_v3 = vld [vmem:[%s1154_s1 + $0x18] ss:$0 sps:$4 sm:$0x11]   ;;  %v819_v4 = vld [vmem:[%s1154_s1 + $0x10] sm:$0xff]   ;;  %vm106_vm1 = vcmask 1040384   ;;  %vm102_vm2 = vcmask 408576  }
  0x15   :  { %778 = vmatprep.subr.bf16.mxu0 %v901_v0  ;;  %786 = vmatprep.mubr.msk.bf16.mxu0 %vm902_vm0, %v901_v0  ;;  %v108_v5 = vsel %vm106_vm1, %v820_v3, 0  ;;  %v821_v6 = vld [vmem:[#allocation2] sm:$0xff]   ;;  %v823_v8 = vld [vmem:[%s1155_s2 + $0x8] sm:$0xff]   ;;  %v824_v9 = vld [vmem:[%s1155_s2 + $0x10] sm:$0xff]   ;;  %vm308_vm3 = vcmask 523264   ;;  %vm377_vm4 = vcmask 261120  }
  0x16   :  { %747 = vmatpush3.bf16.msra.mxu1 %v817_v1  ;;  %v822_v7 = vld [vmem:[%s1155_s2] sm:$0xff]   ;;  %v825_v10 = vld [vmem:[%s1155_s2 + $0x18] sm:$0xff]   ;;  %v827_v12 = vld [vmem:[%s1155_s2 + $0x28] sm:$0xff]   ;;  %v903_v54 = vmov 0  }
  0x17   :  { %748 = vmatprep.subr.bf16.mxu1 %v901_v0  ;;  %v826_v11 = vld [vmem:[%s1155_s2 + $0x20] sm:$0xff]   ;;  %v828_v13 = vld [vmem:[%s1155_s2 + $0x30] sm:$0xff]   ;;  %v829_v14 = vld [vmem:[%s1155_s2 + $0x38] sm:$0xff]  }
  0x18   :  { %v830_v15 = vld [vmem:[%s1156_s3] sm:$0xff]   ;;  %v831_v16 = vld [vmem:[%s1156_s3 + $0x8] sm:$0xff]   ;;  %v832_v27 = vld [vmem:[%s1156_s3 + $0x10] sm:$0xff]  }
  0x19   :  { %779 = vmatpush3.bf16.msra.mxu0 %v830_v15  ;;  %v666_v17 = vld [vmem:[%s1160_s7] ss:$0 sm:$0xff]  ;;  %v833_v28 = vld [vmem:[%s1156_s3 + $0x18] sm:$0xff]   ;;  %v835_v40 = vld [vmem:[%s1157_s4 + $0x8] sm:$0xff]  }
  0x1a   :  { %749 = vmatpush3.bf16.msra.mxu1 %v818_v2  ;;  %780 = vmatprep.subr.bf16.mxu0 %v901_v0  ;;  %v673_v29 = vld [vmem:[%s1161_s8] ss:$0 sm:$0xff]  ;;  %v837_v42 = vld [vmem:[%s1158_s5 + $0x8] sm:$0xff]   ;;  %v838_v51 = vld [vmem:[%s1158_s5 + $0x10] sm:$0xff]  }
  0x1b   :  { %750 = vmatprep.subr.bf16.mxu1 %v901_v0  ;;  %v834_v38 = vld [vmem:[%s1157_s4] sm:$0xff]   ;;  %v839_v52 = vld [vmem:[%s1158_s5 + $0x18] sm:$0xff]   ;;  %v841_v55 = vld [vmem:[%s1159_s6 + $0x8] sm:$0xff]  }
  0x1c   :  { %v836_v41 = vld [vmem:[%s1158_s5] sm:$0xff]   ;;  %v842_v56 = vld [vmem:[%s1159_s6 + $0x10] sm:$0xff]   ;;  %v843_v57 = vld [vmem:[%s1159_s6 + $0x18] sm:$0xff]  }
  0x1d   :  { %781 = vmatpush3.bf16.msra.mxu0 %v831_v16  ;;  %v682_v43 = vld [vmem:[%s1162_s9] ss:$0 sm:$0xff]  ;;  %v845_v59 = vld [vmem:[%s1159_s6 + $0x28] sm:$0xff]   ;;  %v846_v60 = vld [vmem:[%s1159_s6 + $0x30] sm:$0xff]  }
  0x1e   :  { %751 = vmatpush3.bf16.msra.mxu1 %v819_v4  ;;  %782 = vmatprep.subr.bf16.mxu0 %v901_v0  ;;  %v840_v53 = vld [vmem:[%s1159_s6] sm:$0xff]   ;;  %v847_v61 = vld [vmem:[%s1159_s6 + $0x38] sm:$0xff]  }
  0x1f   :  { %752 = vmatprep.subr.bf16.mxu1 %v901_v0  ;;  %v844_v58 = vld [vmem:[%s1159_s6 + $0x20] sm:$0xff]  }
  0x20   :  { %v688_v62 = vld [vmem:[%s1163_s10] ss:$0 sm:$0xff] }
  0x21   :  { %783 = vmatpush3.bf16.msra.mxu0 %v832_v27 }
  0x22   :  { %753 = vmatpush3.bf16.msra.mxu1 %v108_v5  ;;  %784 = vmatprep.subr.bf16.mxu0 %v901_v0 }
  0x23   :  { %758 = vmatprep.subr.bf16.mxu1 %v901_v0 }
  0x25   :  { %755 = vmatmul.mubr.msk.bf16.vlgmr.msra.gmra.mrb[0].mxu1 %vm102_vm2, %v821_v6  ;;  %785 = vmatpush3.bf16.msra.mxu0 %v833_v28 }
  0x26   :  { %759 = vmatpush3.bf16.msra.mxu1 %v822_v7  ;;  %774 = vmatprep.mubr.msk.bf16.mxu1 %vm902_vm0, %v901_v0 }
  0x27   :  { %760 = vmatprep.subr.bf16.mxu1 %v901_v0  ;;  %790 = vmatprep.subr.bf16.mxu0 %v901_v0 }
  0x2a   :  { %761 = vmatpush3.bf16.msra.mxu1 %v823_v8  ;;  %v848_v8 = vld [vmem:[%s1159_s6 + $0x40] sm:$0xff]  }
  0x2b   :  { %762 = vmatprep.subr.bf16.mxu1 %v901_v0 }
  0x2e   :  { %763 = vmatpush3.bf16.msra.mxu1 %v824_v9  ;;  %v849_v9 = vld [vmem:[%s1159_s6 + $0x48] sm:$0xff]   ;;  %s904_s6 = smov [#allocation5]  }
  0x2f   :  { %764 = vmatprep.subr.bf16.mxu1 %v901_v0  ;;  %s654_s15 = sshll.u32 %s904_s6, 4  ;;  %s655_s15 = int_to_ptr.vmem [resolvable:$true] %s654_s15 }
  0x30   :  { %p877_p9 = scmp.lt.s32.totalorder %s655_s15, %s655_s15 }
  0x32   :  { %765 = vmatpush3.bf16.msra.mxu1 %v825_v10  ;;  %v692_v10 = vld [vmem:[%s1164_s11] ss:$0 sm:$0xff]  ;;  %s872_s11 = scalar_lea.vmem %s655_s15, 128 }
  0x33   :  { %766 = vmatprep.subr.bf16.mxu1 %v901_v0  ;;  %p873_p8 = scmp.ne.s32.totalorder %s655_s15, %s872_s11  ;;  %p878_p10 = scmp.lt.s32.totalorder %s872_s11, %s872_s11 }
  0x35   :  { %p879_p11 = por %p878_p10, %p877_p9 }
  0x36   :  { %767 = vmatpush3.bf16.msra.mxu1 %v826_v11 }
  0x37   :  { %768 = vmatprep.subr.bf16.mxu1 %v901_v0  ;;  %p880_p12 = pnand %p879_p11, %p873_p8 }
  0x3a   :  { %769 = vmatpush3.bf16.msra.mxu1 %v827_v12 }
  0x3b   :  { %770 = vmatprep.subr.bf16.mxu1 %v901_v0 }
  0x3e   :  { %771 = vmatpush3.bf16.msra.mxu1 %v828_v13 }
  0x3f   :  { %772 = vmatprep.subr.bf16.mxu1 %v901_v0 }
  0x42   :  { %773 = vmatpush3.bf16.msra.mxu1 %v829_v14 }
  0x43   :  { %798 = vmatprep.subr.bf16.mxu1 %v901_v0 }
  0xf8   :  { %v144_v18 = vpop.f32.mrb[0].mxu1 }
  0xf9   :  { %v145_v19 = vadd.f32 %v666_v17, %v144_v18  ;;  %v756_v20 = vpop.f32.mrb[1].mxu1 }
  0xfa   :  { %v147_v21 = vpop.f32.mrb[2].mxu1  ;;  %v698_v20 = vld [vmem:[%s1165_s12] ss:$0 sm:$0xff] }
  0xfb   :  { %v148_v22 = vadd.f32 %v666_v17, %v147_v21  ;;  %v757_v23 = vpop.f32.mrb[3].mxu1  ;;  %v151_v24 = vmax.f32 %v145_v19, 0.0 }
  0xfd   :  { %v152_v25 = vmax.f32 %v148_v22, 0.0 }
  0xff   :  { %v153_v26 = vpack.c.bf16 %v152_v25, %v151_v24 }
 0x101   :  { %775 = vmatmul.mubr.bf16.vlgmr.msra.gmra.mrb[4].mxu1 %v153_v26 }
 0x102   :  { %806 = vmatprep.mubr.msk.bf16.mxu1 %vm902_vm0, %v901_v0  ;;  %799 = vmatpush3.bf16.msra.mxu1 %v836_v41 }
 0x103   :  { %800 = vmatprep.subr.bf16.mxu1 %v901_v0 }
 0x106   :  { %801 = vmatpush3.bf16.msra.mxu1 %v837_v42 }
 0x107   :  { %802 = vmatprep.subr.bf16.mxu1 %v901_v0 }
 0x10a   :  { %803 = vmatpush3.bf16.msra.mxu1 %v838_v51 }
 0x10b   :  { %804 = vmatprep.subr.bf16.mxu1 %v901_v0 }
 0x10e   :  { %805 = vmatpush3.bf16.msra.mxu1 %v839_v52 }
 0x1d4   :  { %v259_v30 = vpop.f32.mrb[4].mxu1 }
 0x1d5   :  { %v260_v31 = vadd.f32 %v673_v29, %v259_v30  ;;  %v776_v32 = vpop.f32.mrb[5].mxu1 }
 0x1d6   :  { %v262_v33 = vpop.f32.mrb[6].mxu1 }
 0x1d7   :  { %v263_v34 = vadd.f32 %v673_v29, %v262_v33  ;;  %v777_v35 = vpop.f32.mrb[7].mxu1  ;;  %v266_v36 = vmax.f32 %v260_v31, 0.0 }
 0x1d9   :  { %v267_v37 = vmax.f32 %v263_v34, 0.0 }
 0x1db   :  { %v268_v39 = vpack.c.bf16 %v267_v37, %v266_v36 }
 0x1dd   :  { %787 = vmatmul.mubr.msk.bf16.vlgmr.msra.gmra.mrb[0].mxu0 %vm308_vm3, %v268_v39 }
 0x1de   :  { %791 = vmatpush3.bf16.msra.mxu0 %v834_v38  ;;  %794 = vmatprep.mubr.msk.bf16.mxu0 %vm902_vm0, %v901_v0 }
 0x1df   :  { %792 = vmatprep.subr.bf16.mxu0 %v901_v0 }
 0x1e2   :  { %793 = vmatpush3.bf16.msra.mxu0 %v835_v40 }
 0x1e3   :  { %598 = vmatprep.subr.bf16.mxu0 %v903_v54 }
 0x2b0   :  { %v346_v44 = vpop.f32.mrb[0].mxu0 }
 0x2b1   :  { %v788_v45 = vpop.f32.mrb[1].mxu0  ;;  %v347_v47 = vadd.f32 %v682_v43, %v346_v44 }
 0x2b2   :  { %v349_v46 = vpop.f32.mrb[2].mxu0 }
 0x2b3   :  { %v350_v48 = vadd.f32 %v682_v43, %v349_v46  ;;  %v789_v49 = vpop.f32.mrb[3].mxu0 }
 0x2b5   :  { %v353_v50 = vpack.c.bf16 %v350_v48, %v347_v47 }
 0x2b7   :  { %795 = vmatmul.mubr.msk.bf16.vlgmr.msra.gmra.mrb[4].mxu0 %vm377_vm4, %v353_v50 }
 0x2b8   :  { %709 = vmatprep.mubr.msk.bf16.mxu0 %vm377_vm4, %v353_v50  ;;  %599 = vmatpush1.bf16.msra.mxu0 %v840_v53 }
 0x2b9   :  { %600 = vmatprep.subr.bf16.mxu0 %v903_v54 }
 0x2bc   :  { %601 = vmatpush1.bf16.msra.mxu0 %v841_v55 }
 0x2bd   :  { %602 = vmatprep.subr.bf16.mxu0 %v903_v54 }
 0x2c0   :  { %603 = vmatpush1.bf16.msra.mxu0 %v842_v56 }
 0x2c1   :  { %604 = vmatprep.subr.bf16.mxu0 %v903_v54 }
 0x2c4   :  { %605 = vmatpush1.bf16.msra.mxu0 %v843_v57 }
 0x2c5   :  { %606 = vmatprep.subr.bf16.mxu0 %v903_v54 }
 0x2c8   :  { %607 = vmatpush1.bf16.msra.mxu0 %v844_v58 }
 0x2c9   :  { %608 = vmatprep.subr.bf16.mxu0 %v903_v54 }
 0x2cc   :  { %609 = vmatpush1.bf16.msra.mxu0 %v845_v59 }
 0x2cd   :  { %610 = vmatprep.subr.bf16.mxu0 %v903_v54 }
 0x2d0   :  { %611 = vmatpush1.bf16.msra.mxu0 %v846_v60 }
 0x2d1   :  { %612 = vmatprep.subr.bf16.mxu0 %v903_v54 }
 0x2d4   :  { %613 = vmatpush1.bf16.msra.mxu0 %v847_v61 }
 0x2d5   :  { %614 = vmatprep.subr.bf16.mxu0 %v903_v54 }
 0x2d8   :  { %615 = vmatpush1.bf16.msra.mxu0 %v848_v8 }
 0x2d9   :  { %616 = vmatprep.subr.bf16.mxu0 %v903_v54 }
 0x2dc   :  { %617 = vmatpush1.bf16.msra.mxu0 %v849_v9 }
 0x38a   :  { %v415_v63 = vpop.f32.mrb[4].mxu0 }
 0x38b   :  { %v416_v0 = vadd.f32 %v688_v62, %v415_v63  ;;  %v796_v1 = vpop.f32.mrb[5].mxu0 }
 0x38c   :  { %v418_v2 = vpop.f32.mrb[6].mxu0 }
 0x38d   :  { %v419_v3 = vadd.f32 %v688_v62, %v418_v2  ;;  %v797_v4 = vpop.f32.mrb[7].mxu0  ;;  %v422_v5 = vmax.f32 %v416_v0, 0.0 }
 0x38f   :  { %v423_v6 = vmax.f32 %v419_v3, 0.0 }
 0x391   :  { %v424_v7 = vpack.c.bf16 %v423_v6, %v422_v5 }
 0x393   :  { %807 = vmatmul.mubr.msk.bf16.vlgmr.msra.gmra.mrb[8].mxu1 %vm308_vm3, %v424_v7 }
 0x466   :  { %v501_v11 = vpop.f32.mrb[8].mxu1 }
 0x467   :  { %v502_v12 = vadd.f32 %v692_v10, %v501_v11  ;;  %v808_v13 = vpop.f32.mrb[9].mxu1 }
 0x468   :  { %v504_v14 = vpop.f32.mrb[10].mxu1 }
 0x469   :  { %v505_v15 = vadd.f32 %v692_v10, %v504_v14  ;;  %v809_v16 = vpop.f32.mrb[11].mxu1  ;;  %v508_v17 = vmax.f32 %v502_v12, 0.0 }
 0x46b   :  { %v509_v18 = vmax.f32 %v505_v15, 0.0 }
 0x46d   :  { %v510_v19 = vpack.c.bf16 %v509_v18, %v508_v17 }
 0x46f   :  { %631 = vmatmul.mubr.bf16.vlgmr.msra.gmra.mrb[8].mxu0 %v510_v19 }
 0x542   :  { %v632_v21 = vpop.f32.mrb[8].mxu0 }
 0x543   :  { %v634_v22 = vpop.f32.mrb[9].mxu0  ;;  %v633_v24 = vadd.f32 %v698_v20, %v632_v21 }
 0x544   :  { %v635_v23 = vpop.f32.mrb[10].mxu0 }
 0x545   :  { %v636_v25 = vadd.f32 %v698_v20, %v635_v23  ;;  %v637_v26 = vpop.f32.mrb[11].mxu0 }
 0x547   :  { %v717_v27 = vpack.c.bf16 %v636_v25, %v633_v24 }
 0x549   :  { %718 = vst [vmem:[#allocation5] sm:$0xff] %v717_v27  }
 0x54a   :  { %883 = shalt.err (!%p880_p12)
}
 0x54b   :  { %s884_s2 = scalar_lea.hbm %s1166_s13, 128 }
 0x54c   :  { %p885_p13 = scmp.ne.s32.totalorder %s1166_s13, %s884_s2  ;;  %p888_p0 = scmp.lt.u32.totalorder %s884_s2, %s1166_s13 }
 0x54e   :  { %p890_p1 = pnand %p888_p0, %p885_p13 }
 0x550   :  { %893 = shalt.err (!%p890_p1)
}
 0x551   :  { %660 = dma.vmem_to_hbm [thread:$0]  %s655_s15, 128, %s1166_s13, [#allocation4], %s899_s18, %s899_s18, %s900_s19  }
 0x552   :  { %896 = dma.done.wait [#allocation4], 128  }
 0x553   :  { %897 = vsyncadd [#allocation4], 4294967168 }
 0x554   :  { %664 = vsyncpa [#allocation3], 1 }
 0x555   :  { %665 = vsyncpa [#allocation4], 1 }

</bundles_post_ra>
